<compile_context>
chip_gen: v5e
topology: v5e:2x2
jax: 0.10.0
libtpu: 0.0.40
codegen_flags: <defaults>
</compile_context>

<pallas_src>
import jax
import jax.numpy as jnp
from jax.experimental import pallas as pl
from jax.experimental.pallas import tpu as pltpu


def _round_up(x, n):
    return ((x + n - 1) // n) * n


def _mlp_kernel(x_ref, w1_ref, b1_ref, w2_ref, b2_ref, o_ref):
    # x_ref:  (TM, C_in)    row tile, incoming dtype (f32)
    # w1_ref: (C_in, C_in)  full, VMEM-resident (bf16 or f32)
    # b1_ref: (1, C_in)     full, f32
    # w2_ref: (C_in, C_out) full, VMEM-resident (bf16 or f32)
    # b2_ref: (1, C_out)    full, f32
    # o_ref:  (TM, C_out)   natural row-major tile
    #
    # Operand cast to the matmul dtype happens here (near-free VPU op) so the
    # wrapper never makes an extra HBM pass over x.
    x = x_ref[...].astype(w1_ref.dtype)
    h = jnp.dot(x, w1_ref[...], preferred_element_type=jnp.float32) + b1_ref[...]
    h = jnp.maximum(h, 0.0)                                   # ReLU in f32
    y = jnp.dot(h.astype(w2_ref.dtype), w2_ref[...],
                preferred_element_type=jnp.float32) + b2_ref[...]
    # Exact sigmoid (epilogue is hidden under DMA in this mem-bound regime).
    o_ref[...] = (1.0 / (1.0 + jnp.exp(-y))).astype(o_ref.dtype)


def slot_attention_classifier(x, w1, b1, w2, b2, *, tm=4096, use_bf16=True,
                              out_dtype=jnp.float32):
    """x: (..., C_in). Returns (..., C_out) in `out_dtype` (default f32)."""
    c_in = w1.shape[0]
    c_out = w2.shape[1]
    lead_shape = x.shape[:-1]

    # Free, view-level reshape: no cast, no pad, no copy of x.
    x2d = x.reshape(-1, c_in)
    m = x2d.shape[0]

    # Row tile: multiple of 8 (sublane), never larger than M rounded up to 8.
    tm_eff = _round_up(max(min(tm, _round_up(m, 8)), 8), 8)
    # v7x megacore: keep >=2 grid steps when there is enough work to split
    # (near-zero cost on single-TC v5e/v6e: one extra ~0.35us grid step).
    if m > 128:
        tm_eff = min(tm_eff, max(128, _round_up(pl.cdiv(m, 2), 128)))

    grid = (pl.cdiv(m, tm_eff),)   # partial last tile handled by Pallas masking

    mat_dtype = jnp.bfloat16 if use_bf16 else jnp.float32
    w1m = w1.astype(mat_dtype)                       # tiny constants: free cast
    w2m = w2.astype(mat_dtype)
    b1_2d = b1.reshape(1, c_in).astype(jnp.float32)
    b2_2d = b2.reshape(1, c_out).astype(jnp.float32)

    out = pl.pallas_call(
        _mlp_kernel,
        out_shape=jax.ShapeDtypeStruct((m, c_out), out_dtype),
        grid_spec=pltpu.PrefetchScalarGridSpec(
            num_scalar_prefetch=0,
            grid=grid,
            in_specs=[
                pl.BlockSpec((tm_eff, c_in), lambda i: (i, 0)),  # x row tile
                pl.BlockSpec((c_in, c_in), lambda i: (0, 0)),    # W1 (resident)
                pl.BlockSpec((1, c_in), lambda i: (0, 0)),       # b1 (resident)
                pl.BlockSpec((c_in, c_out), lambda i: (0, 0)),   # W2 (resident)
                pl.BlockSpec((1, c_out), lambda i: (0, 0)),      # b2 (resident)
            ],
            out_specs=pl.BlockSpec((tm_eff, c_out), lambda i: (i, 0)),
        ),
        compiler_params=pltpu.CompilerParams(
            dimension_semantics=("parallel",),   # megacore-shardable row axis
        ),
    )(x2d, w1m, b1_2d, w2m, b2_2d)

    return out.reshape(*lead_shape, c_out)


def init_params(key, in_channels, out_channels):
    """Deterministic init mirroring nn.Linear shapes (uniform +/- 1/sqrt(fan_in))."""
    k1, k2, k3, k4 = jax.random.split(key, 4)
    lim = 1.0 / jnp.sqrt(in_channels)
    # Stored already transposed relative to PyTorch (out, in) -> (in, out)
    w1 = jax.random.uniform(k1, (in_channels, in_channels), jnp.float32, -lim, lim)
    b1 = jax.random.uniform(k2, (in_channels,), jnp.float32, -lim, lim)
    w2 = jax.random.uniform(k3, (in_channels, out_channels), jnp.float32, -lim, lim)
    b2 = jax.random.uniform(k4, (out_channels,), jnp.float32, -lim, lim)
    return w1, b1, w2, b2


def reference(x, w1, b1, w2, b2):
    h = jnp.maximum(x @ w1 + b1, 0.0)
    return jax.nn.sigmoid(h @ w2 + b2)


if __name__ == "__main__":
    key = jax.random.PRNGKey(0)
    kx, kp, kx2 = jax.random.split(key, 3)

    # Small shapes consistent with slot-attention usage: (batch, num_slots, C_in)
    batch, num_slots, in_channels, out_channels = 2, 8, 32, 16
    x = jax.random.normal(kx, (batch, num_slots, in_channels), jnp.float32)
    w1, b1, w2, b2 = init_params(kp, in_channels, out_channels)
    ref = reference(x, w1, b1, w2, b2)

    # 1) f32-operand path: exact sigmoid, tight check of kernel structure.
    out_f32 = jax.block_until_ready(
        slot_attention_classifier(x, w1, b1, w2, b2, use_bf16=False))
    assert out_f32.shape == (batch, num_slots, out_channels)
    assert jnp.allclose(out_f32, ref, atol=2e-3, rtol=2e-3), "f32 kernel mismatch"

    # 2) default bf16-matmul-operand path: looser tolerance.
    out = jax.block_until_ready(slot_attention_classifier(x, w1, b1, w2, b2))
    assert out.shape == (batch, num_slots, out_channels)
    assert jnp.allclose(out, ref, atol=3e-2, rtol=3e-2), "bf16 kernel mismatch"

    # 3) ragged row count (M=15, not a multiple of the tile): exercises the
    #    in-kernel partial-tile (masked) path with no wrapper-side padding.
    x_rag = jax.random.normal(kx2, (3, 5, in_channels), jnp.float32)
    ref_rag = reference(x_rag, w1, b1, w2, b2)
    out_rag = jax.block_until_ready(
        slot_attention_classifier(x_rag, w1, b1, w2, b2, use_bf16=False))
    assert out_rag.shape == (3, 5, out_channels)
    assert jnp.allclose(out_rag, ref_rag, atol=2e-3, rtol=2e-3), "ragged mismatch"

    print("KERNEL_OK")
</pallas_src>

<mosaic_0001>
module attributes {stable_mosaic.version = 11 : i64} {
  func.func @_mlp_kernel(%arg0: i32, %arg1: memref<16x32xf32, #tpu.memory_space<vmem>>, %arg2: memref<32x32xf32, #tpu.memory_space<vmem>>, %arg3: memref<1x32xf32, #tpu.memory_space<vmem>>, %arg4: memref<32x16xf32, #tpu.memory_space<vmem>>, %arg5: memref<1x16xf32, #tpu.memory_space<vmem>>, %arg6: memref<16x16xf32, #tpu.memory_space<vmem>>) attributes {dimension_semantics = [#tpu.dimension_semantics<parallel>], iteration_bounds = array<i64: 1>, scalar_prefetch = 0 : i64, scratch_operands = 0 : i64, tpu.core_type = #tpu.core_type<tc>, window_params = [{transform_indices = @transform_0, window_bounds = array<i64: 16, 32>}, {pipeline_mode = #tpu.pipeline_mode<synchronous>, transform_indices = @transform_1, window_bounds = array<i64: 32, 32>}, {pipeline_mode = #tpu.pipeline_mode<synchronous>, transform_indices = @transform_2, window_bounds = array<i64: 1, 32>}, {pipeline_mode = #tpu.pipeline_mode<synchronous>, transform_indices = @transform_3, window_bounds = array<i64: 32, 16>}, {pipeline_mode = #tpu.pipeline_mode<synchronous>, transform_indices = @transform_4, window_bounds = array<i64: 1, 16>}, {transform_indices = @transform_5, window_bounds = array<i64: 16, 16>}]} {
    %c0 = arith.constant 0 : index
    %c0_0 = arith.constant 0 : index
    %0 = vector.load %arg1[%c0, %c0_0] : memref<16x32xf32, #tpu.memory_space<vmem>>, vector<16x32xf32>
    %c0_1 = arith.constant 0 : index
    %c0_2 = arith.constant 0 : index
    %1 = vector.load %arg2[%c0_1, %c0_2] : memref<32x32xf32, #tpu.memory_space<vmem>>, vector<32x32xf32>
    %cst = arith.constant dense<0.000000e+00> : vector<16x32xf32>
    %2 = tpu.matmul %0, %1, %cst {dimension_numbers = #tpu.dot_dimension_numbers<[1], [0], [0], [1], [0, 0, 1, 1], [], []>} : vector<16x32xf32>, vector<32x32xf32>, vector<16x32xf32> -> vector<16x32xf32>
    %c0_3 = arith.constant 0 : index
    %c0_4 = arith.constant 0 : index
    %3 = vector.load %arg3[%c0_3, %c0_4] : memref<1x32xf32, #tpu.memory_space<vmem>>, vector<1x32xf32>
    %4 = vector.broadcast %3 : vector<1x32xf32> to vector<16x32xf32>
    %5 = arith.addf %2, %4 : vector<16x32xf32>
    %cst_5 = arith.constant 0.000000e+00 : f32
    %6 = vector.broadcast %cst_5 : f32 to vector<16x32xf32>
    %7 = arith.maximumf %5, %6 : vector<16x32xf32>
    %c0_6 = arith.constant 0 : index
    %c0_7 = arith.constant 0 : index
    %8 = vector.load %arg4[%c0_6, %c0_7] : memref<32x16xf32, #tpu.memory_space<vmem>>, vector<32x16xf32>
    %cst_8 = arith.constant dense<0.000000e+00> : vector<16x16xf32>
    %9 = tpu.matmul %7, %8, %cst_8 {dimension_numbers = #tpu.dot_dimension_numbers<[1], [0], [0], [1], [0, 0, 1, 1], [], []>} : vector<16x32xf32>, vector<32x16xf32>, vector<16x16xf32> -> vector<16x16xf32>
    %c0_9 = arith.constant 0 : index
    %c0_10 = arith.constant 0 : index
    %10 = vector.load %arg5[%c0_9, %c0_10] : memref<1x16xf32, #tpu.memory_space<vmem>>, vector<1x16xf32>
    %11 = vector.broadcast %10 : vector<1x16xf32> to vector<16x16xf32>
    %12 = arith.addf %9, %11 : vector<16x16xf32>
    %cst_11 = arith.constant 0.000000e+00 : f32
    %13 = vector.broadcast %cst_11 : f32 to vector<16x16xf32>
    %14 = arith.subf %13, %12 : vector<16x16xf32>
    %15 = math.exp %14 : vector<16x16xf32>
    %cst_12 = arith.constant 1.000000e+00 : f32
    %16 = vector.broadcast %cst_12 : f32 to vector<16x16xf32>
    %17 = arith.addf %16, %15 : vector<16x16xf32>
    %cst_13 = arith.constant 1.000000e+00 : f32
    %18 = vector.broadcast %cst_13 : f32 to vector<16x16xf32>
    %19 = arith.divf %18, %17 : vector<16x16xf32>
    %c0_14 = arith.constant 0 : index
    %c0_15 = arith.constant 0 : index
    %20 = vector.load %arg6[%c0_14, %c0_15] : memref<16x16xf32, #tpu.memory_space<vmem>>, vector<16x16xf32>
    tpu.vector_store %arg6[%c0_14, %c0_15], %19 {strides = array<i32>} : memref<16x16xf32, #tpu.memory_space<vmem>>, vector<16x16xf32>,
    return
  }
  func.func @transform_0(%arg0: i32) -> (i32, i32) {
    %c0_i32 = arith.constant 0 : i32
    %c0_i32_0 = arith.constant 0 : i32
    return %arg0, %c0_i32 : i32, i32
  }
  func.func @transform_1(%arg0: i32) -> (i32, i32) {
    %c0_i32 = arith.constant 0 : i32
    %c0_i32_0 = arith.constant 0 : i32
    %c0_i32_1 = arith.constant 0 : i32
    return %c0_i32, %c0_i32_0 : i32, i32
  }
  func.func @transform_2(%arg0: i32) -> (i32, i32) {
    %c0_i32 = arith.constant 0 : i32
    %c0_i32_0 = arith.constant 0 : i32
    %c0_i32_1 = arith.constant 0 : i32
    return %c0_i32, %c0_i32_0 : i32, i32
  }
  func.func @transform_3(%arg0: i32) -> (i32, i32) {
    %c0_i32 = arith.constant 0 : i32
    %c0_i32_0 = arith.constant 0 : i32
    %c0_i32_1 = arith.constant 0 : i32
    return %c0_i32, %c0_i32_0 : i32, i32
  }
  func.func @transform_4(%arg0: i32) -> (i32, i32) {
    %c0_i32 = arith.constant 0 : i32
    %c0_i32_0 = arith.constant 0 : i32
    %c0_i32_1 = arith.constant 0 : i32
    return %c0_i32, %c0_i32_0 : i32, i32
  }
  func.func @transform_5(%arg0: i32) -> (i32, i32) {
    %c0_i32 = arith.constant 0 : i32
    %c0_i32_0 = arith.constant 0 : i32
    return %arg0, %c0_i32 : i32, i32
  }
}

</mosaic_0001>

<bundles_post_ra>
// kernel: tpu_custom_call.1
= control target key start
LH: loop header
LB: loop body
LE: loop exit
PB: predicated region body
PF: predicated region fallthrough
CT: control target
= control target key end

     0   :  { %s288_s0 = inlined_call_operand.vmem [shape: f32[16,32], index: 0, kind: input, shape index: {}]   ;;  %s289_s1 = inlined_call_operand.vmem [shape: f32[32,32], index: 1, kind: input, shape index: {}]   ;;  %s290_s2 = inlined_call_operand.vmem [shape: f32[1,32], index: 2, kind: input, shape index: {}]   ;;  %s291_s3 = inlined_call_operand.vmem [shape: f32[32,16], index: 3, kind: input, shape index: {}]   ;;  %s292_s4 = inlined_call_operand.vmem [shape: f32[1,16], index: 4, kind: input, shape index: {}]   ;;  %s293_s5 = inlined_call_operand.hbm [shape: f32[16,16], index: 5, kind: output, shape index: {}]  }
   0x1   :  { %v26_v0 = vld [vmem:[%s289_s1 + $0x18] sm:$0xff]  ;;  %v25_v1 = vld [vmem:[%s289_s1 + $0x10] sm:$0xff]  ;;  %v24_v2 = vld [vmem:[%s289_s1 + $0x8] sm:$0xff] }
   0x2   :  { %50 = vmatpush.msra.mxu0 %v26_v0  ;;  %163 = vmatpush.msra.mxu2 %v26_v0  ;;  %v66_v3 = vld [vmem:[%s291_s3 + $0x18] sm:$0xff] }
   0x4   :  { %51 = vmatpush.msra.mxu0 %v25_v1  ;;  %164 = vmatpush.msra.mxu2 %v25_v1 }
   0x5   :  { %10 = vsyncpa [#allocation3], 0  ;;  %v23_v4 = vld [vmem:[%s289_s1] sm:$0xff]  ;;  %89 = vmatpush.msra.mxu1 %v66_v3  ;;  %167 = vmatpush.msra.mxu3 %v66_v3  ;;  %vm31_vm0 = vcmask 261120   ;;  %v22_v6 = vld [vmem:[%s288_s0 + $0x8] sm:$0xff]  ;;  %vm138_vm5 = vcmask 130048  }
   0x6   :  { %52 = vmatpush.msra.mxu0 %v24_v2  ;;  %165 = vmatpush.msra.mxu2 %v24_v2  ;;  %v21_v5 = vld [vmem:[%s288_s0] sm:$0xff]  ;;  %v65_v7 = vld [vmem:[%s291_s3 + $0x10] sm:$0xff]  ;;  %v64_v8 = vld [vmem:[%s291_s3 + $0x8] sm:$0xff]  ;;  %s147_s16 = sshll.u32 %s293_s5, 4  ;;  %s211_s17 = smov 128   ;;  %s148_s16 = int_to_ptr.hbm [resolvable:$true] %s147_s16 }
   0x7   :  { %90 = vmatpush.msra.mxu1 %v65_v7  ;;  %168 = vmatpush.msra.mxu3 %v65_v7  ;;  %v63_v9 = vld [vmem:[%s291_s3] sm:$0xff]  ;;  %s212_s18 = smov 8  }
   0x8   :  { %53 = vmatpush.msra.mxu0 %v23_v4  ;;  %166 = vmatpush.msra.mxu2 %v23_v4  ;;  %v174_v10 = vld [vmem:[%s290_s2] ss:$0 sm:$0xff]  ;;  %s210_s2 = smov [#allocation2]  }
   0x9   :  { %159 = vmatmul.msk.f32.vlgmr.msra.gmra.mxu0 %vm31_vm0, %v21_v5  ;;  %160 = vmatmul.msk.f32.vlgmr.msra.gmra.mxu2 %vm31_vm0, %v22_v6  ;;  %v175_v17 = vld [vmem:[%s292_s4] ss:$0 sm:$0xff]  ;;  %s145_s3 = sshll.u32 %s210_s2, 4  ;;  %s146_s3 = int_to_ptr.vmem [resolvable:$true] %s145_s3 }
   0xa   :  { %91 = vmatpush.msra.mxu1 %v64_v8  ;;  %169 = vmatpush.msra.mxu3 %v64_v8 }
   0xc   :  { %92 = vmatpush.msra.mxu1 %v63_v9  ;;  %170 = vmatpush.msra.mxu3 %v63_v9 }
  0x86   :  { %v55_v11 = vpop.f32.mrf.mxu0 }
  0x87   :  { %v56_v12 = vadd.f32 %v174_v10, %v55_v11 }
  0x89   :  { %v61_v13 = vmax.f32 %v56_v12, 0.0 }
  0x8b   :  { %161 = vmatmul.msk.f32.vlgmr.msra.gmra.mxu1 %vm31_vm0, %v61_v13 }
  0x8c   :  { %v58_v14 = vpop.f32.mrf.mxu2 }
  0x8d   :  { %v59_v15 = vadd.f32 %v174_v10, %v58_v14 }
  0x8f   :  { %v62_v16 = vmax.f32 %v59_v15, 0.0 }
  0x91   :  { %162 = vmatmul.msk.f32.vlgmr.msra.gmra.mxu3 %vm31_vm0, %v62_v16 }
 0x108   :  { %v94_v18 = vpop.f32.mrf.mxu1 }
 0x109   :  { %v95_v19 = vadd.f32 %v175_v17, %v94_v18 }
 0x10b   :  { %v100_v20 = vsub.f32 0.0, %v95_v19 }
 0x10d   :  { %v102_v21 = vmul.f32 1.442695, %v100_v20 }
 0x10f   :  { %176 = vpow2.f32 %v102_v21 }
 0x114   :  { %v97_v22 = vpop.f32.mrf.mxu3 }
 0x115   :  { %v177_v23 = vpop.eup %176  ;;  %v98_v24 = vadd.f32 %v175_v17, %v97_v22 }
 0x116   :  { %v106_v25 = vadd.f32 1.0, %v177_v23 }
 0x117   :  { %v101_v26 = vsub.f32 0.0, %v98_v24 }
 0x118   :  { %178 = vrcp.f32 %v106_v25  ;;  %v119_v30 = vand.u32 2147483648, %v106_v25  ;;  %vm113_vm1 = vweird.f32 %v106_v25  ;;  %v117_v33 = vand.u32 2147483647, %v106_v25 }
 0x119   :  { %v104_v27 = vmul.f32 1.442695, %v101_v26 }
 0x11a   :  { %v120_v36 = vor.u32 1.1754944e-38, %v119_v30  ;;  %vm118_vm4 = vcmp.eq.f32.partialorder %v117_v33, 8.507059e+37 }
 0x11b   :  { %180 = vpow2.f32 %v104_v27 }
 0x11e   :  { %v179_v28 = vpop.eup %178 }
 0x11f   :  { %v109_v29 = vmul.f32 %v179_v28, %v106_v25  ;;  %vm114_vm2 = vweird.f32 %v179_v28 }
 0x120   :  { %vm115_vm3 = vmor %vm113_vm1, %vm114_vm2 }
 0x121   :  { %v181_v31 = vpop.eup %180  ;;  %v110_v32 = vsub.f32 1.0, %v109_v29 }
 0x122   :  { %v107_v34 = vadd.f32 1.0, %v181_v31 }
 0x123   :  { %v111_v35 = vmul.f32 %v179_v28, %v110_v32 }
 0x124   :  { %182 = vrcp.f32 %v107_v34  ;;  %v134_v43 = vand.u32 2147483648, %v107_v34  ;;  %v132_v45 = vand.u32 2147483647, %v107_v34  ;;  %vm128_vm7 = vweird.f32 %v107_v34 }
 0x125   :  { %v112_v37 = vadd.f32 %v179_v28, %v111_v35 }
 0x126   :  { %v135_v47 = vor.u32 1.1754944e-38, %v134_v43  ;;  %vm133_vm9 = vcmp.eq.f32.partialorder %v132_v45, 8.507059e+37 }
 0x127   :  { %v116_v38 = vsel %vm115_vm3, %v179_v28, %v112_v37 }
 0x128   :  { %v121_v39 = vsel %vm118_vm4, %v120_v36, %v116_v38 }
 0x129   :  { %139 = vst.msk [vmem:[#allocation2] sm:$0xff] %vm138_vm5, %v121_v39 }
 0x12a   :  { %v183_v40 = vpop.eup %182 }
 0x12b   :  { %v124_v41 = vmul.f32 %v183_v40, %v107_v34  ;;  %vm129_vm6 = vweird.f32 %v183_v40 }
 0x12c   :  { %vm130_vm8 = vmor %vm128_vm7, %vm129_vm6 }
 0x12d   :  { %v125_v42 = vsub.f32 1.0, %v124_v41 }
 0x12f   :  { %v126_v44 = vmul.f32 %v183_v40, %v125_v42 }
 0x131   :  { %v127_v46 = vadd.f32 %v183_v40, %v126_v44 }
 0x133   :  { %v131_v48 = vsel %vm130_vm8, %v183_v40, %v127_v46 }
 0x134   :  { %v136_v49 = vsel %vm133_vm9, %v135_v47, %v131_v48 }
 0x135   :  { %140 = vst.msk [vmem:[#allocation2 + $0x8] sm:$0xff] %vm138_vm5, %v136_v49 }
 0x136   :  { %153 = dma.vmem_to_hbm [thread:$0]  %s146_s3, 256, %s148_s16, [#allocation3], %s211_s17, %s211_s17, %s212_s18  }
 0x137   :  { %208 = dma.done.wait [#allocation3], 256  }
 0x138   :  { %209 = vsyncadd [#allocation3], 4294967040 }
 0x139   :  { %158 = vsyncpa [#allocation3], 1 }

</bundles_post_ra>
